<compile_context>
chip_gen: v6e
topology: v6e:2x2x1
jax: 0.10.0
libtpu: 0.0.40
codegen_flags: <defaults>
</compile_context>

<pallas_src>
import jax
import jax.numpy as jnp
from jax.experimental import pallas as pl
from jax.experimental.pallas import tpu as pltpu


def _masked_style_kernel(style_ref, fixed_ref, mask_ref, fmap_ref, out_ref):
    # style_ref : (1, 1, C)       per-batch style row
    # fixed_ref : (1, C)          full block, resident across the grid
    # mask_ref  : (1, T_HW)       spatial tile of the mask
    # fmap_ref  : (1, C, T_HW)    per-(batch, spatial-tile) fmap block
    # out_ref   : (1, C, T_HW)
    style = style_ref[0, 0].astype(jnp.float32)   # (C,)
    fixed = fixed_ref[0].astype(jnp.float32)      # (C,)
    mask = mask_ref[0].astype(jnp.float32)        # (T_HW,)

    # modulation[c, s] = fixed[c] + (style[c] - fixed[c]) * mask[s]
    delta = style - fixed                                         # (C,)
    modulation = fixed[:, None] + delta[:, None] * mask[None, :]  # (C, T_HW) f32

    out_ref[0] = (modulation * fmap_ref[0]).astype(out_ref.dtype)


def _pick_spatial_tile(hw, c, itemsize, target_bytes=2 << 20):
    """Largest multiple of 128 that divides hw with C*T*itemsize <= target."""
    if hw % 128 != 0:
        return hw  # (8,128) rule: non-128-multiple last dim must be full
    per_lane_bytes = max(1, c * itemsize)
    t = (target_bytes // per_lane_bytes) // 128 * 128
    t = max(128, min(hw, t))
    while hw % t != 0:          # keep blocks evenly dividing -> unmasked stores
        t -= 128
    return t


def apply_masked_style(fmap, style, mask, fixed_style, *, tile_hw=None):
    """fmap: [B, C, H, W], style: [B, C], mask: [1, 1, H, W], fixed_style: [1, C]."""
    B, C, H, W = fmap.shape
    HW = H * W

    fmap_flat = fmap.reshape(B, C, HW)
    mask_flat = mask.reshape(1, HW)
    style3 = style.reshape(B, 1, C)   # per-batch delivery via BlockSpec

    itemsize = jnp.dtype(fmap.dtype).itemsize
    if tile_hw is None:
        tile_hw = _pick_spatial_tile(HW, C, itemsize)
    n_hw = pl.cdiv(HW, tile_hw)

    cost = pl.CostEstimate(
        flops=3 * B * C * HW,
        transcendentals=0,
        bytes_accessed=2 * B * C * HW * itemsize + (B * C + C + HW) * 4,
    )

    out_flat = pl.pallas_call(
        _masked_style_kernel,
        out_shape=jax.ShapeDtypeStruct((B, C, HW), fmap.dtype),
        grid_spec=pltpu.PrefetchScalarGridSpec(
            num_scalar_prefetch=0,
            grid=(B, n_hw),
            in_specs=[
                pl.BlockSpec((1, 1, C), lambda b, s: (b, 0, 0)),        # style row
                pl.BlockSpec((1, C), lambda b, s: (0, 0)),              # fixed_style
                pl.BlockSpec((1, tile_hw), lambda b, s: (0, s)),        # mask tile
                pl.BlockSpec((1, C, tile_hw), lambda b, s: (b, 0, s)),  # fmap tile
            ],
            out_specs=pl.BlockSpec((1, C, tile_hw), lambda b, s: (b, 0, s)),
        ),
        compiler_params=pltpu.CompilerParams(
            dimension_semantics=("parallel", "parallel")),
        cost_estimate=cost,
    )(style3, fixed_style, mask_flat, fmap_flat)

    out_fmap = out_flat.reshape(B, C, H, W)
    # style output: fixed_style.expand(B, -1) — pure broadcast, done as glue.
    out_style = jnp.broadcast_to(fixed_style, (B, C))
    return out_fmap, out_style


if __name__ == "__main__":
    B, C, H, W = 2, 4, 16, 16
    key = jax.random.PRNGKey(0)
    k_fmap, k_style, k_fixed, k_mask = jax.random.split(key, 4)

    fmap = jax.random.normal(k_fmap, (B, C, H, W), dtype=jnp.float32)
    style = jax.random.normal(k_style, (B, C), dtype=jnp.float32)
    # deterministic "buffers" from the module __init__:
    fixed_style = jax.random.normal(k_fixed, (1, C), dtype=jnp.float32)
    # soft spatial mask in [0, 1], broadcastable over batch & channel
    mask = jax.random.uniform(k_mask, (1, 1, H, W), dtype=jnp.float32)

    # tile_hw=128 forces a genuine 2-D (batch x spatial) grid at this toy size.
    out_fmap, out_style = apply_masked_style(
        fmap, style, mask, fixed_style, tile_hw=128)
    out_fmap = jax.block_until_ready(out_fmap)
    out_style = jax.block_until_ready(out_style)

    # plain-JAX reference for correctness
    ref_mod = style[:, :, None, None] * mask + fixed_style[:, :, None, None] * (1.0 - mask)
    ref_fmap = ref_mod * fmap
    ref_style = jnp.broadcast_to(fixed_style, (B, C))

    assert jnp.allclose(out_fmap, ref_fmap, atol=1e-5, rtol=1e-5)
    assert jnp.allclose(out_style, ref_style)
    print("KERNEL_OK")
</pallas_src>

<mosaic_0001>
module attributes {stable_mosaic.version = 11 : i64} {
  func.func @_masked_style_kernel(%arg0: i32, %arg1: i32, %arg2: memref<1x1x4xf32, #tpu.memory_space<vmem>>, %arg3: memref<1x4xf32, #tpu.memory_space<vmem>>, %arg4: memref<1x128xf32, #tpu.memory_space<vmem>>, %arg5: memref<1x4x128xf32, #tpu.memory_space<vmem>>, %arg6: memref<1x4x128xf32, #tpu.memory_space<vmem>>) attributes {dimension_semantics = [#tpu.dimension_semantics<parallel>, #tpu.dimension_semantics<parallel>], iteration_bounds = array<i64: 2, 2>, scalar_prefetch = 0 : i64, scratch_operands = 0 : i64, tpu.core_type = #tpu.core_type<tc>, window_params = [{transform_indices = @transform_0, window_bounds = array<i64: 1, 1, 4>}, {pipeline_mode = #tpu.pipeline_mode<synchronous>, transform_indices = @transform_1, window_bounds = array<i64: 1, 4>}, {transform_indices = @transform_2, window_bounds = array<i64: 1, 128>}, {transform_indices = @transform_3, window_bounds = array<i64: 1, 4, 128>}, {transform_indices = @transform_4, window_bounds = array<i64: 1, 4, 128>}]} {
    %c0 = arith.constant 0 : index
    %c0_0 = arith.constant 0 : index
    %c0_1 = arith.constant 0 : index
    %0 = vector.load %arg2[%c0, %c0_0, %c0_1] : memref<1x1x4xf32, #tpu.memory_space<vmem>>, vector<1x1x4xf32>
    %1 = vector.shape_cast %0 : vector<1x1x4xf32> to vector<4xf32>
    %c0_2 = arith.constant 0 : index
    %c0_3 = arith.constant 0 : index
    %2 = vector.load %arg3[%c0_2, %c0_3] : memref<1x4xf32, #tpu.memory_space<vmem>>, vector<1x4xf32>
    %3 = vector.shape_cast %2 : vector<1x4xf32> to vector<4xf32>
    %c0_4 = arith.constant 0 : index
    %c0_5 = arith.constant 0 : index
    %4 = vector.load %arg4[%c0_4, %c0_5] : memref<1x128xf32, #tpu.memory_space<vmem>>, vector<1x128xf32>
    %5 = vector.shape_cast %4 : vector<1x128xf32> to vector<128xf32>
    %6 = arith.subf %1, %3 : vector<4xf32>
    %7 = vector.shape_cast %3 : vector<4xf32> to vector<4x1xf32>
    %8 = vector.shape_cast %6 : vector<4xf32> to vector<4x1xf32>
    %9 = vector.shape_cast %5 : vector<128xf32> to vector<1x128xf32>
    %10 = vector.broadcast %8 : vector<4x1xf32> to vector<4x128xf32>
    %11 = vector.broadcast %9 : vector<1x128xf32> to vector<4x128xf32>
    %12 = arith.mulf %10, %11 : vector<4x128xf32>
    %13 = vector.broadcast %7 : vector<4x1xf32> to vector<4x128xf32>
    %14 = arith.addf %13, %12 : vector<4x128xf32>
    %c0_6 = arith.constant 0 : index
    %c0_7 = arith.constant 0 : index
    %c0_8 = arith.constant 0 : index
    %15 = vector.load %arg5[%c0_6, %c0_7, %c0_8] : memref<1x4x128xf32, #tpu.memory_space<vmem>>, vector<1x4x128xf32>
    %16 = vector.shape_cast %15 : vector<1x4x128xf32> to vector<4x128xf32>
    %17 = arith.mulf %14, %16 : vector<4x128xf32>
    %c0_9 = arith.constant 0 : index
    %c0_10 = arith.constant 0 : index
    %c0_11 = arith.constant 0 : index
    %18 = vector.load %arg6[%c0_9, %c0_10, %c0_11] : memref<1x4x128xf32, #tpu.memory_space<vmem>>, vector<1x4x128xf32>
    %19 = vector.shape_cast %18 : vector<1x4x128xf32> to vector<4x128xf32>
    %20 = vector.shape_cast %17 : vector<4x128xf32> to vector<1x4x128xf32>
    tpu.vector_store %arg6[%c0_9, %c0_10, %c0_11], %20 {strides = array<i32>} : memref<1x4x128xf32, #tpu.memory_space<vmem>>, vector<1x4x128xf32>,
    return
  }
  func.func @transform_0(%arg0: i32, %arg1: i32) -> (i32, i32, i32) {
    %c0_i32 = arith.constant 0 : i32
    %c0_i32_0 = arith.constant 0 : i32
    %c0_i32_1 = arith.constant 0 : i32
    return %arg0, %c0_i32, %c0_i32_0 : i32, i32, i32
  }
  func.func @transform_1(%arg0: i32, %arg1: i32) -> (i32, i32) {
    %c0_i32 = arith.constant 0 : i32
    %c0_i32_0 = arith.constant 0 : i32
    %c0_i32_1 = arith.constant 0 : i32
    return %c0_i32, %c0_i32_0 : i32, i32
  }
  func.func @transform_2(%arg0: i32, %arg1: i32) -> (i32, i32) {
    %c0_i32 = arith.constant 0 : i32
    %c0_i32_0 = arith.constant 0 : i32
    return %c0_i32, %arg1 : i32, i32
  }
  func.func @transform_3(%arg0: i32, %arg1: i32) -> (i32, i32, i32) {
    %c0_i32 = arith.constant 0 : i32
    %c0_i32_0 = arith.constant 0 : i32
    return %arg0, %c0_i32, %arg1 : i32, i32, i32
  }
  func.func @transform_4(%arg0: i32, %arg1: i32) -> (i32, i32, i32) {
    %c0_i32 = arith.constant 0 : i32
    %c0_i32_0 = arith.constant 0 : i32
    return %arg0, %c0_i32, %arg1 : i32, i32, i32
  }
}

</mosaic_0001>

<bundles_post_ra>
// kernel: tpu_custom_call.1
= control target key start
LH: loop header
LB: loop body
LE: loop exit
PB: predicated region body
PF: predicated region fallthrough
CT: control target
= control target key end

     0   :  { %s1021_s0 = inlined_call_operand.hbm [shape: f32[2,1,4], index: 0, kind: input, shape index: {}]   ;;  %s1022_s1 = inlined_call_operand.vmem [shape: f32[1,4], index: 1, kind: input, shape index: {}]   ;;  %s1023_s2 = inlined_call_operand.vmem [shape: f32[1,256], index: 2, kind: input, shape index: {}]   ;;  %s1024_s3 = inlined_call_operand.hbm [shape: f32[2,4,256], index: 3, kind: input, shape index: {}]   ;;  %s1025_s4 = inlined_call_operand.hbm [shape: f32[2,4,256], index: 4, kind: output, shape index: {}]  }
   0x1   :  { %1035 = sst [smem:[#allocation16_spill]] %s1021_s0 }
   0x2   :  { %1036 = sst [smem:[#allocation17_spill]] %s1022_s1 }
   0x3   :  { %1037 = sst [smem:[#allocation18_spill]] %s1023_s2 }
   0x4   :  { %1038 = sst [smem:[#allocation19_spill]] %s1025_s4 }
   0x5   :  { %9 = vsyncpa [#allocation3], 0 }
   0x6   :  { %11 = vsyncpa [#allocation3 + $0x1], 0 }
   0x7   :  { %12 = vsyncpa [#allocation6], 0 }
   0x8   :  { %14 = vsyncpa [#allocation6 + $0x1], 0 }
   0x9   :  { %15 = vsyncpa [#allocation4], 0 }
   0xa   :  { %17 = vsyncpa [#allocation4 + $0x1], 0  ;;  %s772_s15 = smov 0   ;;  %s774_s16 = smov 0  }
   0xb   :  { %s776_s17 = smov 0   ;;  %s778_s18 = smov 0  }
   0xc   :  { %s780_s19 = smov 0   ;;  %s782_s20 = smov 0  }
   0xd   :  { %s784_s21 = smov 0   ;;  %s786_s22 = smov 0  }
   0xe   :  { %s788_s23 = smov 0   ;;  %s790_s24 = smov 0  }
   0xf   :  { %s792_s25 = smov 0  }
  0x10 LB: > { %1039 = sst [smem:[#allocation11_spill]] %s702_s15  ;;  %s438_s26 = sadd.s32 4294967295, %s742_s25   ;;  %s742_s25 = sphi %s792_s25, %s23_s25   ;;  %s738_s24 = sphi %s790_s24, %s1074_s24   ;;  %s734_s23 = sphi %s788_s23, %s1073_s23   ;;  %s730_s22 = sphi %s786_s22, %s1072_s22   ;;  %s726_s21 = sphi %s784_s21, %s1071_s21   ;;  %s722_s20 = sphi %s782_s20, %s1070_s20   ;;  %s718_s19 = sphi %s780_s19, %s1069_s19   ;;  %s714_s18 = sphi %s778_s18, %s1068_s18   ;;  %s710_s17 = sphi %s776_s17, %s1067_s17   ;;  %s706_s16 = sphi %s774_s16, %s1066_s16   ;;  %s702_s15 = sphi %s772_s15, %s1065_s15  }
  0x11   : > { %s42_s27 = sadd.s32 1, %s722_s20  ;;  %p49_p0 = scmp.ne.s32.totalorder %s722_s20, %s718_s19 }
  0x12   : > { %p50_p1 = scmp.eq.s32.totalorder %s742_s25, 0  ;;  %p55_p2 = scmp.ne.s32.totalorder %s718_s19, %s714_s18 }
  0x13   : > { %p833_p3 = scmp.eq.s32.totalorder %s438_s26, 0  ;;  %p1026_p6 = scmp.lt.s32.totalorder %s742_s25, 4 }
  0x14   : > { %p51_p4 = por %p50_p1, %p49_p0  ;;  %s185_s30 = sand.u32 1, %s722_s20  }
  0x15   : > { %p841_p5 = por %p833_p3, %p55_p2  ;;  %s442_s5 = sshll.u32 %s738_s24, 4 }
  0x16   : > { %s1042_s0 = sld [smem:[#allocation16_spill]]  ;;  %s188_s9 = scalar_lea.vmem [#allocation2], %s185_s30 }
  0x17   : > { %s195_s10 = sshll.u32 %s188_s9, 4  ;;  %p853_p7 = pnand %p1026_p6, %p51_p4  ;;  %s196_s10 = int_to_ptr.vmem [resolvable:$true] %s195_s10 }
  0x18   : > { %p446_p8 = scmp.ge.s32.totalorder %s742_s25, 1  ;;  %p226_p9 = scmp.lt.s32.totalorder %s742_s25, 5 }
  0x19   : > { %s186_s12 = scalar_lea.sflag [#allocation3], %s185_s30  ;;  %p564_p10 = pneg %p853_p7 }
  0x1a   : > { %s575_s13 = scalar_lea.vmem %s196_s10, 16  ;;  %s744_s14 = smov [#allocation2]  }
  0x1b   : > { %p576_p11 = scmp.ne.s32.totalorder %s196_s10, %s575_s13  ;;  %s580_s18 = sshll.u32 %s744_s14, 4  ;;  %s581_s18 = int_to_ptr.vmem [resolvable:$false] %s580_s18 }
  0x1c   : > { %s193_s8 = scalar_lea.hbm %s1042_s0, %s442_s5  ;;  %s582_s5 = scalar_lea.vmem %s581_s18, 32 }
  0x1d   : > { %p578_p12 = pnand %p576_p11, %p564_p10  ;;  %p583_p0 = scmp.lt.s32.totalorder %s196_s10, %s581_s18 }
  0x1e   : > { %p584_p2 = scmp.lt.s32.totalorder %s582_s5, %s575_s13 }
  0x1f   : > { %p579_p13 = pneg %p578_p12 }
  0x20   : > { %p585_p4 = por %p584_p2, %p583_p0 }
  0x22   : > { %p586_p6 = pnand %p585_p4, %p579_p13 }
  0x24   : > { %589 = shalt.err (!%p586_p6)
}
  0x25   : > { %464 = dma.hbm_to_vmem [thread:$0]  (!%p853_p7), %s193_s8, 16, %s196_s10, %s186_s12  }
  0x26   : > { %p867_p6 = pnand %p446_p8, %p226_p9  ;;  %s439_s6 = sadd.s32 4294967294, %s742_s25  }
  0x27   : > { %s32_s7 = sadd.s32 1, %s734_s23  ;;  %s35_s9 = sadd.s32 1, %s738_s24 }
  0x28   : > { %p33_p10 = scmp.ge.s32.totalorder %s32_s7, 2  ;;  %s117_s11 = sadd.s32 1, %s710_s17 }
  0x29   : > { %p124_p11 = scmp.ne.s32.totalorder %s710_s17, %s706_s16  ;;  %p130_p9 = scmp.ne.s32.totalorder %s706_s16, %s702_s15 }
  0x2a   : > { %s1076_s7 = smov (%p33_p10, %s32_s7), 0  ;;  %s1078_s9 = smov (!%p33_p10, %s35_s9), %s738_s24 }
  0x2b   : > { %1045 = sst [smem:[#allocation12_spill]] %s1076_s7  ;;  %s113_s8 = ssub.s32 %s734_s23, %s1076_s7 }
  0x2c   : > { %p884_p7 = por %p124_p11, %p50_p1  ;;  %p37_p8 = scmp.ge.s32.totalorder %s1078_s9, 2 }
  0x2d   : > { %p156_p12 = scmp.eq.s32.totalorder %s438_s26, 3  ;;  %p162_p13 = scmp.eq.s32.totalorder %s439_s6, 3 }
  0x2e   : > { %s1080_s9 = smov (%p37_p8, %s1078_s9), 0  ;;  %p896_p0 = por %p130_p9, %p833_p3 }
  0x2f   : > { %1047 = sst [smem:[#allocation13_spill]] %s1080_s9  ;;  %p900_p2 = por %p156_p12, %p124_p11 }
  0x30   : > { %s39_s14 = ssub.s32 %s738_s24, %s1080_s9  ;;  %p906_p1 = por %p162_p13, %p130_p9 }
  0x31   : > { %s1049_s13 = scalar_select %p900_p2, 1, 0 }
  0x32   : > { %s1051_s18 = scalar_select %p906_p1, 1, 0 }
  0x33   : > { %1050 = sst [smem:[#allocation14_spill]] %s1049_s13  ;;  %p40_p4 = scmp.eq.s32.totalorder %s39_s14, 0 }
  0x34   : > { %1052 = sst [smem:[#allocation15_spill]] %s1051_s18  ;;  %s114_s26 = sor.u32 %s113_s8, %s39_s14 }
  0x35   : > { %p115_p10 = scmp.eq.s32.totalorder %s114_s26, 0  ;;  %s208_s28 = sand.u32 1, %s710_s17  }
  0x36   : > { %s914_s5 = scalar_select %p40_p4, %s722_s20, %s42_s27  }
  0x37   : > { %s917_s6 = scalar_select %p115_p10, %s710_s17, %s117_s11  }
  0x38   : > { %s443_s0 = sshll.u32 %s208_s28, 2  ;;  %s444_s7 = sshll.u32 %s738_s24, 1 }
  0x39   : > { %s217_s15 = sadd.s32 %s734_s23, %s444_s7  ;;  %s212_s4 = scalar_lea.vmem [#allocation5], %s443_s0 }
  0x3a   : > { %s221_s9 = sshll.u32 %s212_s4, 4  ;;  %s445_s13 = sshll.u32 %s217_s15, 6  ;;  %s222_s9 = int_to_ptr.vmem [resolvable:$true] %s221_s9 }
  0x3b   : > { %s219_s18 = scalar_lea.hbm %s1024_s3, %s445_s13  ;;  %p1053_p3 = scmp.lt.s32.totalorder %s742_s25, 4 }
  0x3c   : > { %s209_s27 = scalar_lea.sflag [#allocation6], %s208_s28  ;;  %s603_s11 = scalar_lea.vmem %s222_s9, 64 }
  0x3d   : > { %p928_p11 = pnand %p1053_p3, %p884_p7  ;;  %p604_p9 = scmp.ne.s32.totalorder %s222_s9, %s603_s11 }
  0x3e   : > { %s745_s0 = smov [#allocation5]  }
  0x3f   : > { %p592_p8 = pneg %p928_p11  ;;  %s608_s4 = sshll.u32 %s745_s0, 4  ;;  %s609_s4 = int_to_ptr.vmem [resolvable:$false] %s608_s4 }
  0x40   : > { %s610_s15 = scalar_lea.vmem %s609_s4, 128  ;;  %p611_p4 = scmp.lt.s32.totalorder %s222_s9, %s609_s4 }
  0x41   : > { %p606_p12 = pnand %p604_p9, %p592_p8  ;;  %p612_p10 = scmp.lt.s32.totalorder %s610_s15, %s603_s11 }
  0x43   : > { %p607_p13 = pneg %p606_p12  ;;  %p613_p1 = por %p612_p10, %p611_p4 }
  0x45   : > { %p614_p2 = pnand %p613_p1, %p607_p13 }
  0x47   : > { %617 = shalt.err (!%p614_p2)
}
  0x48   : > { %467 = dma.hbm_to_vmem [thread:$0]  (!%p928_p11), %s219_s18, 64, %s222_s9, %s209_s27  }
  0x49   : > { %230 = sbr.rel (%p867_p6) target bundleno = 230 (0xe6), region = 36  ;;  %s232_s1 = sand.u32 (!%p867_p6), 1, %s718_s19  }
  0x4a   : > { %s233_s2 = scalar_lea.sflag (!%p867_p6), [#allocation3], %s232_s1  ;;  %s235_s7 = scalar_lea.vmem (!%p867_p6), [#allocation2], %s232_s1 }
  0x4e   : > { %689 = dma.done.wait (%p841_p5), %s233_s2, 16  }
  0x4f   : > { %691 = vsyncadd (%p841_p5), %s233_s2, 4294967280  ;;  %s944_s10 = sand.u32 1, %s706_s16  }
  0x50   : > { %s447_s9 = sshll.u32 %s944_s10, 2  ;;  %s241_s13 = scalar_lea.sflag [#allocation6], %s944_s10 }
  0x51   : > { %s244_s30 = scalar_lea.vmem [#allocation5], %s447_s9 }
  0x52   : > { %693 = dma.done.wait (%p896_p0), %s241_s13, 64  }
  0x53   : > { %695 = vsyncadd (%p896_p0), %s241_s13, 4294967232  ;;  %v283_v0 = vlaneseq  ;;  %v279_v3 = vld [vmem:[%s235_s7] sm:$0x1]  ;;  %s1055_s18 = sld [smem:[#allocation17_spill]]  ;;  %p276_p5 = scmp.lt.s32.totalorder %s726_s21, 1 }
  0x54   : > { %s1056_s8 = sld [smem:[#allocation18_spill]]  ;;  %s451_s11 = sshll.u32 %s730_s22, 1  ;;  %v305_v11 = vld [vmem:[%s244_s30] sm:$0xf] }
  0x55   : > { %v284_v1 = vshrl.u32 %v283_v0, 7  ;;  %s277_s12 = scalar_select %p276_p5, %s726_s21, 1 }
  0x56   : > { %s1057_s0 = sld [smem:[#allocation14_spill]]  ;;  %s320_s4 = sadd.s32 %s726_s21, %s451_s11 }
  0x57   : > { %v285_v2 = vsub.s32 0, %v284_v1  ;;  %s452_s15 = sshll.u32 %s320_s4, 6  ;;  %s275_s1 = scalar_lea.vmem [#allocation7], %s447_s9 }
  0x58   : > { %s324_s2 = sshll.u32 %s275_s1, 4  ;;  %s1058_s29 = sld [smem:[#allocation19_spill]]  ;;  %s325_s2 = int_to_ptr.vmem [resolvable:$true] %s324_s2 }
  0x59   : > { %v280_v4 = vld [vmem:[%s1055_s18] sm:$0x1]  ;;  %s309_s22 = scalar_lea.sflag [#allocation4], %s944_s10  ;;  %s618_s18 = scalar_lea.vmem %s325_s2, 64 }
  0x5a   : > { %v282_v5 = vsub.f32 %v279_v3, %v280_v4  ;;  %v286_v7 = vrot.slane %v280_v4, %v285_v2  ;;  %s278_s27 = scalar_lea.vmem %s1056_s8, %s277_s12  ;;  %p619_p6 = scmp.ne.s32.totalorder %s325_s2, %s618_s18 }
  0x5b   : > { %v449_v8 = vld [vmem:[%s278_s27] ss:$0 sm:$0xff]  ;;  %s746_s21 = smov [#allocation7]  }
  0x5c   : > { %v293_v6 = vrot.slane %v282_v5, %v285_v2  ;;  %p1059_p7 = scmp.ne.s32.totalorder %s1057_s0, 0  ;;  %s622_s30 = sshll.u32 %s746_s21, 4  ;;  %s623_s30 = int_to_ptr.vmem [resolvable:$false] %s622_s30 }
  0x5d   : > { %s624_s9 = scalar_lea.vmem %s623_s30, 128  ;;  %p625_p1 = scmp.lt.s32.totalorder %s325_s2, %s623_s30 }
  0x5e   : > { %295 = vbcast.lane.b32.xlu0 %v293_v6, 256  ;;  %s965_s14 = scalar_lea.hbm %s1058_s29, %s452_s15  ;;  %p620_p0 = pnand %p619_p6, %p1059_p7 }
  0x5f   : > { %p626_p3 = scmp.lt.s32.totalorder %s624_s9, %s618_s18 }
  0x60   : > { %p621_p2 = pneg %p620_p0 }
  0x61   : > { %p627_p11 = por %p626_p3, %p625_p1 }
  0x62   : > { %288 = vbcast.lane.b32.xlu0 %v286_v7, 256 }
  0x63   : > { %p628_p8 = pnand %p627_p11, %p621_p2 }
  0xd0   : > { %v296_v9 = vpop.permute.xlu0 %295 }
  0xd1   : > { %v303_v10 = vmul.f32 %v449_v8, %v296_v9 }
  0xd4   : > { %v289_v12 = vpop.permute.xlu0 %288 }
  0xd5   : > { %v304_v13 = vadd.f32 %v303_v10, %v289_v12 }
  0xd7   : > { %v306_v14 = vmul.f32 %v305_v11, %v304_v13 }
  0xd9   : > { %307 = vst [vmem:[%s275_s1] sm:$0xf] %v306_v14 }
  0xda   : > { %631 = shalt.err (!%p628_p8)
}
  0xdb   : > { %s632_s12 = scalar_lea.hbm %s965_s14, 64  ;;  %s636_s28 = scalar_lea.hbm %s1058_s29, 256 }
  0xdc   : > { %p633_p9 = scmp.ne.s32.totalorder %s965_s14, %s632_s12  ;;  %p637_p4 = scmp.lt.s32.totalorder %s965_s14, %s1058_s29 }
  0xdd   : > { %p638_p10 = scmp.lt.s32.totalorder %s636_s28, %s632_s12 }
  0xde   : > { %p634_p12 = pnand %p633_p9, %p1059_p7 }
  0xdf   : > { %p639_p5 = por %p638_p10, %p637_p4 }
  0xe0   : > { %p635_p13 = pneg %p634_p12 }
  0xe2   : > { %p640_p6 = pnand %p639_p5, %p635_p13 }
  0xe4   : > { %643 = shalt.err (!%p640_p6)
}
  0xe5   : > { %459 = dma.vmem_to_hbm [thread:$0]  (%p1059_p7), %s325_s2, 64, %s965_s14, %s309_s22  }
  0xe6 PF: > { %s1060_s11 = sld [smem:[#allocation11_spill]]  ;;  %p473_p0 = scmp.ge.s32.totalorder %s742_s25, 2 }
  0xe7   : > { %s1061_s4 = sld [smem:[#allocation15_spill]] }
  0xec   : > { %s336_s15 = sand.u32 1, %s1060_s11  }
  0xed   : > { %p1062_p2 = scmp.ne.s32.totalorder %s1061_s4, 0  ;;  %s337_s1 = scalar_lea.sflag [#allocation4], %s336_s15 }
  0xef   : > { %p469_p1 = pnand %p473_p0, %p1062_p2 }
  0xf1   : > { %p470_p3 = pneg %p469_p1 }
  0xf3   : > { %697 = dma.done.wait (%p470_p3), %s337_s1, 64  }
  0xf4   : > { %699 = vsyncadd (%p470_p3), %s337_s1, 4294967232  ;;  %s23_s25 = sadd.s32 1, %s742_s25   ;;  %s1063_s0 = sld [smem:[#allocation12_spill]] }
  0xf5   : > { %p20_p11 = scmp.ge.s32.totalorder %s23_s25, 6   ;;  %s1064_s2 = sld [smem:[#allocation13_spill]] }
  0xf6   : > { %s1065_s15 = smov %s706_s16  ;;  %s1066_s16 = smov %s710_s17 }
  0xf7   : > { %s1067_s17 = smov %s917_s6  ;;  %s1068_s18 = smov %s718_s19 }
  0xf8   : > { %s1069_s19 = smov %s722_s20  ;;  %s1070_s20 = smov %s914_s5 }
  0xf9   : > { %s1071_s21 = smov %s734_s23  ;;  %s1072_s22 = smov %s738_s24 }
  0xfa   : > { %s1073_s23 = smov %s1063_s0  ;;  %22 = sbr.rel (!%p20_p11) target bundleno = 16 (0x10), region = 97 }
  0xfb   : > { %s1074_s24 = smov %s1064_s2 }
  0xff   :  { %342 = vsyncpa [#allocation3], 1 }
 0x100   :  { %344 = vsyncpa [#allocation3 + $0x1], 1 }
 0x101   :  { %345 = vsyncpa [#allocation6], 1 }
 0x102   :  { %347 = vsyncpa [#allocation6 + $0x1], 1 }
 0x103   :  { %348 = vsyncpa [#allocation4], 1 }
 0x104   :  { %350 = vsyncpa [#allocation4 + $0x1], 1 }

</bundles_post_ra>
